<compile_context>
chip_gen: v5e
topology: v5e:2x2
jax: 0.10.0
libtpu: 0.0.40
codegen_flags: <defaults>
</compile_context>

<pallas_src>
import jax
import jax.numpy as jnp
from jax.experimental import pallas as pl
from jax.experimental.pallas import tpu as pltpu


def _round_up(n, m):
    return ((n + m - 1) // m) * m


def ncf_forward(user_ids, movie_ids, params, *, tm=1024, tn=2048):
    """Embedding gathers in JAX; one fused Pallas kernel for the per-row MLP +
    (B,1)+(1,B) broadcast-add + clamp over the (B, B) output."""
    B = int(user_ids.shape[0])

    user_embeds = jnp.take(params["user_emb"], user_ids, axis=0)     # (B, E)
    movie_embeds = jnp.take(params["movie_emb"], movie_ids, axis=0)  # (B, E)
    x = jnp.concatenate([user_embeds, movie_embeds], axis=1)         # (B, 2E)

    ub = jnp.take(params["user_bias"], user_ids, axis=0)             # (B, 1)
    mb = jnp.take(params["movie_bias"], movie_ids, axis=0)           # (B, 1)
    bias_row = (ub + mb).reshape(1, -1)                              # (1, B)

    # ---- tile selection -----------------------------------------------------
    # TM multiple of 8 (sublane), TN multiple of 128 (unmasked lane-dense vst).
    TM = min(tm, _round_up(B, 8))
    if B >= 16:
        # Keep >=2 row tiles so the "parallel" row axis can shard across v7x's
        # two TensorCores instead of degenerating to a 1xN grid.
        TM = min(TM, _round_up(-(-B // 2), 8))
    TN = min(tn, _round_up(B, 128))

    n_rows = pl.cdiv(B, TM)
    n_cols = pl.cdiv(B, TN)
    b_cols = n_cols * TN

    # Pre-add the two gathered biases into a single row and pad it (O(B),
    # cheap) so it stays VMEM-resident for the whole grid and is sliced
    # in-kernel at 128-aligned offsets.  The (B, B) output itself is NOT padded.
    bias_pad = jnp.pad(bias_row, ((0, 0), (0, b_cols - B)))          # (1, b_cols)

    two_e = x.shape[1]
    h1_dim = params["w1"].shape[1]
    h2_dim = params["w2"].shape[1]
    w3_row = params["w3"].reshape(1, h2_dim)                         # (1, 16)

    def kernel(x_ref, w1_ref, b1_ref, w2_ref, b2_ref, w3_ref, b3_ref,
               bias_ref, o_ref, mlp_sc):
        j = pl.program_id(1)

        # Per-row-tile MLP, computed once per row tile (only at j == 0).
        @pl.when(j == 0)
        def _():
            a1 = jnp.dot(x_ref[...], w1_ref[...],
                         preferred_element_type=jnp.float32)
            a1 = jnp.maximum(a1 + b1_ref[...], 0.0)                  # (TM, 32)
            a2 = jnp.dot(a1, w2_ref[...],
                         preferred_element_type=jnp.float32)
            a2 = jnp.maximum(a2 + b2_ref[...], 0.0)                  # (TM, 16)
            # Final 16 -> 1 projection as multiply + lane reduce (avoids an
            # N=1 MXU matmul that would waste 255/256 of the output lanes).
            mlp_sc[...] = (jnp.sum(a2 * w3_ref[...], axis=-1, keepdims=True)
                           + b3_ref[...])                            # (TM, 1)

        # Broadcast-add a slice of the resident bias row + clamp (pure VPU,
        # lane-dense stores).
        col0 = pl.multiple_of(j * TN, 128)
        bias_tile = bias_ref[:, pl.ds(col0, TN)]                     # (1, TN)
        o_ref[...] = jnp.clip(mlp_sc[...] + bias_tile, 0.5, 5.0)

    # VMEM budget: double-buffered output + x tiles, resident bias row, scratch.
    # Raise the scoped limit so defaults also work on v5e (16 MiB default);
    # cap below v7x's 64 MiB physical per-TC VMEM.
    vmem_need = (2 * TM * TN + 2 * TM * two_e + 8 * b_cols + TM * 128) * 4
    vmem_limit = min(64 * 1024 * 1024,
                     max(32 * 1024 * 1024, vmem_need + (8 << 20)))

    out = pl.pallas_call(
        kernel,
        out_shape=jax.ShapeDtypeStruct((B, B), jnp.float32),   # unpadded: Pallas
        grid=(n_rows, n_cols),                                  # masks edge tiles
        in_specs=[
            pl.BlockSpec((TM, two_e), lambda i, j: (i, 0)),      # row tile of x
            pl.BlockSpec((two_e, h1_dim), lambda i, j: (0, 0)),  # weights stay
            pl.BlockSpec((1, h1_dim), lambda i, j: (0, 0)),      # VMEM-resident
            pl.BlockSpec((h1_dim, h2_dim), lambda i, j: (0, 0)),
            pl.BlockSpec((1, h2_dim), lambda i, j: (0, 0)),
            pl.BlockSpec((1, h2_dim), lambda i, j: (0, 0)),
            pl.BlockSpec((1, 1), lambda i, j: (0, 0)),
            pl.BlockSpec((1, b_cols), lambda i, j: (0, 0)),      # full bias row
        ],
        out_specs=pl.BlockSpec((TM, TN), lambda i, j: (i, j)),
        scratch_shapes=[pltpu.VMEM((TM, 1), jnp.float32)],
        compiler_params=pltpu.CompilerParams(
            dimension_semantics=("parallel", "arbitrary"),
            vmem_limit_bytes=vmem_limit,
        ),
    )(x, params["w1"], params["b1"], params["w2"], params["b2"],
      w3_row, params["b3"], bias_pad)

    return out


def make_params(key, n_users, n_movies, embedding_dim=10,
                layer_sizes=(32, 16), avg_rating=None):
    ks = jax.random.split(key, 10)
    sizes = [embedding_dim * 2] + list(layer_sizes)

    def lin(k, fan_in, fan_out):
        bound = 1.0 / jnp.sqrt(fan_in)
        kw, kb = jax.random.split(k)
        w = jax.random.uniform(kw, (fan_in, fan_out), jnp.float32, -bound, bound)
        b = jax.random.uniform(kb, (1, fan_out), jnp.float32, -bound, bound)
        return w, b

    w1, b1 = lin(ks[0], sizes[0], sizes[1])
    w2, b2 = lin(ks[1], sizes[1], sizes[2])
    w3, b3 = lin(ks[2], sizes[2], 1)
    if avg_rating is not None:
        b3 = jnp.full_like(b3, avg_rating)

    return {
        "user_emb": jax.random.normal(ks[3], (n_users, embedding_dim), jnp.float32),
        "movie_emb": jax.random.normal(ks[4], (n_movies, embedding_dim), jnp.float32),
        "user_bias": jax.random.normal(ks[5], (n_users, 1), jnp.float32),
        "movie_bias": jax.random.normal(ks[6], (n_movies, 1), jnp.float32),
        "w1": w1, "b1": b1, "w2": w2, "b2": b2, "w3": w3, "b3": b3,
    }


def _reference(user_ids, movie_ids, params):
    # Pure-JAX reference mirroring the torch forward (including broadcast).
    ue = jnp.take(params["user_emb"], user_ids, axis=0)
    me = jnp.take(params["movie_emb"], movie_ids, axis=0)
    x = jnp.concatenate([ue, me], axis=1)
    h1 = jnp.maximum(x @ params["w1"] + params["b1"], 0.0)
    h2 = jnp.maximum(h1 @ params["w2"] + params["b2"], 0.0)
    mlp = h2 @ params["w3"] + params["b3"]                            # (B, 1)
    ub = jnp.take(params["user_bias"], user_ids, axis=0).squeeze()    # (B,)
    mb = jnp.take(params["movie_bias"], movie_ids, axis=0).squeeze()  # (B,)
    pred = mlp + ub + mb                                              # (B, B)
    return jnp.clip(pred, 0.5, 5.0)


if __name__ == "__main__":
    key = jax.random.PRNGKey(0)
    n_users, n_movies, B = 50, 40, 8

    params = make_params(key, n_users, n_movies, embedding_dim=10,
                         layer_sizes=(32, 16), avg_rating=3.5)

    k1, k2 = jax.random.split(jax.random.PRNGKey(0))
    user_ids = jax.random.randint(k1, (B,), 0, n_users, dtype=jnp.int32)
    movie_ids = jax.random.randint(k2, (B,), 0, n_movies, dtype=jnp.int32)

    out = jax.block_until_ready(ncf_forward(user_ids, movie_ids, params))
    ref = jax.block_until_ready(_reference(user_ids, movie_ids, params))
    assert out.shape == (B, B), out.shape
    assert jnp.allclose(out, ref, atol=1e-4, rtol=1e-5), "mismatch (B=8)"

    # Secondary check: multi-tile grid (2x2), ragged row/col edge tiles, and
    # j>0 reuse of the MLP scratch + dynamic bias-row slice.
    B2 = 300
    k3, k4 = jax.random.split(jax.random.PRNGKey(1))
    uid2 = jax.random.randint(k3, (B2,), 0, n_users, dtype=jnp.int32)
    mid2 = jax.random.randint(k4, (B2,), 0, n_movies, dtype=jnp.int32)
    out2 = jax.block_until_ready(ncf_forward(uid2, mid2, params, tm=256, tn=256))
    ref2 = jax.block_until_ready(_reference(uid2, mid2, params))
    assert out2.shape == (B2, B2), out2.shape
    assert jnp.allclose(out2, ref2, atol=1e-4, rtol=1e-5), "mismatch (B=300)"

    # Tertiary check: default (large-tile) path, tile-aligned rows.
    B3 = 304
    k5, k6 = jax.random.split(jax.random.PRNGKey(2))
    uid3 = jax.random.randint(k5, (B3,), 0, n_users, dtype=jnp.int32)
    mid3 = jax.random.randint(k6, (B3,), 0, n_movies, dtype=jnp.int32)
    out3 = jax.block_until_ready(ncf_forward(uid3, mid3, params))
    ref3 = jax.block_until_ready(_reference(uid3, mid3, params))
    assert out3.shape == (B3, B3), out3.shape
    assert jnp.allclose(out3, ref3, atol=1e-4, rtol=1e-5), "mismatch (B=304)"

    print("KERNEL_OK")
</pallas_src>

<mosaic_0001>
module attributes {stable_mosaic.version = 11 : i64} {
  func.func @kernel(%arg0: i32, %arg1: i32, %arg2: memref<8x20xf32, #tpu.memory_space<vmem>>, %arg3: memref<20x32xf32, #tpu.memory_space<vmem>>, %arg4: memref<1x32xf32, #tpu.memory_space<vmem>>, %arg5: memref<32x16xf32, #tpu.memory_space<vmem>>, %arg6: memref<1x16xf32, #tpu.memory_space<vmem>>, %arg7: memref<1x16xf32, #tpu.memory_space<vmem>>, %arg8: memref<1x1xf32, #tpu.memory_space<vmem>>, %arg9: memref<1x128xf32, #tpu.memory_space<vmem>>, %arg10: memref<8x128xf32, #tpu.memory_space<vmem>>, %arg11: memref<8x1xf32, #tpu.memory_space<vmem>>) attributes {dimension_semantics = [#tpu.dimension_semantics<parallel>, #tpu.dimension_semantics<arbitrary>], iteration_bounds = array<i64: 1, 1>, scalar_prefetch = 0 : i64, scratch_operands = 1 : i64, tpu.core_type = #tpu.core_type<tc>, window_params = [{transform_indices = @transform_0, window_bounds = array<i64: 8, 20>}, {pipeline_mode = #tpu.pipeline_mode<synchronous>, transform_indices = @transform_1, window_bounds = array<i64: 20, 32>}, {pipeline_mode = #tpu.pipeline_mode<synchronous>, transform_indices = @transform_2, window_bounds = array<i64: 1, 32>}, {pipeline_mode = #tpu.pipeline_mode<synchronous>, transform_indices = @transform_3, window_bounds = array<i64: 32, 16>}, {pipeline_mode = #tpu.pipeline_mode<synchronous>, transform_indices = @transform_4, window_bounds = array<i64: 1, 16>}, {pipeline_mode = #tpu.pipeline_mode<synchronous>, transform_indices = @transform_5, window_bounds = array<i64: 1, 16>}, {pipeline_mode = #tpu.pipeline_mode<synchronous>, transform_indices = @transform_6, window_bounds = array<i64: 1, 1>}, {pipeline_mode = #tpu.pipeline_mode<synchronous>, transform_indices = @transform_7, window_bounds = array<i64: 1, 128>}, {transform_indices = @transform_8, window_bounds = array<i64: 8, 128>}]} {
    %c0_i32 = arith.constant 0 : i32
    %0 = arith.cmpi eq, %arg1, %c0_i32 : i32
    %1 = arith.extui %0 : i1 to i32
    %c0_i32_0 = arith.constant 0 : i32
    %2 = arith.cmpi ne, %1, %c0_i32_0 : i32
    scf.if %2 {
      %c0_6 = arith.constant 0 : index
      %c0_7 = arith.constant 0 : index
      %16 = vector.load %arg2[%c0_6, %c0_7] : memref<8x20xf32, #tpu.memory_space<vmem>>, vector<8x20xf32>
      %c0_8 = arith.constant 0 : index
      %c0_9 = arith.constant 0 : index
      %17 = vector.load %arg3[%c0_8, %c0_9] : memref<20x32xf32, #tpu.memory_space<vmem>>, vector<20x32xf32>
      %cst_10 = arith.constant dense<0.000000e+00> : vector<8x32xf32>
      %18 = tpu.matmul %16, %17, %cst_10 {dimension_numbers = #tpu.dot_dimension_numbers<[1], [0], [0], [1], [0, 0, 1, 1], [], []>} : vector<8x20xf32>, vector<20x32xf32>, vector<8x32xf32> -> vector<8x32xf32>
      %c0_11 = arith.constant 0 : index
      %c0_12 = arith.constant 0 : index
      %19 = vector.load %arg4[%c0_11, %c0_12] : memref<1x32xf32, #tpu.memory_space<vmem>>, vector<1x32xf32>
      %20 = vector.broadcast %19 : vector<1x32xf32> to vector<8x32xf32>
      %21 = arith.addf %18, %20 : vector<8x32xf32>
      %cst_13 = arith.constant 0.000000e+00 : f32
      %22 = vector.broadcast %cst_13 : f32 to vector<8x32xf32>
      %23 = arith.maximumf %21, %22 : vector<8x32xf32>
      %c0_14 = arith.constant 0 : index
      %c0_15 = arith.constant 0 : index
      %24 = vector.load %arg5[%c0_14, %c0_15] : memref<32x16xf32, #tpu.memory_space<vmem>>, vector<32x16xf32>
      %cst_16 = arith.constant dense<0.000000e+00> : vector<8x16xf32>
      %25 = tpu.matmul %23, %24, %cst_16 {dimension_numbers = #tpu.dot_dimension_numbers<[1], [0], [0], [1], [0, 0, 1, 1], [], []>} : vector<8x32xf32>, vector<32x16xf32>, vector<8x16xf32> -> vector<8x16xf32>
      %c0_17 = arith.constant 0 : index
      %c0_18 = arith.constant 0 : index
      %26 = vector.load %arg6[%c0_17, %c0_18] : memref<1x16xf32, #tpu.memory_space<vmem>>, vector<1x16xf32>
      %27 = vector.broadcast %26 : vector<1x16xf32> to vector<8x16xf32>
      %28 = arith.addf %25, %27 : vector<8x16xf32>
      %cst_19 = arith.constant 0.000000e+00 : f32
      %29 = vector.broadcast %cst_19 : f32 to vector<8x16xf32>
      %30 = arith.maximumf %28, %29 : vector<8x16xf32>
      %c0_20 = arith.constant 0 : index
      %c0_21 = arith.constant 0 : index
      %31 = vector.load %arg7[%c0_20, %c0_21] : memref<1x16xf32, #tpu.memory_space<vmem>>, vector<1x16xf32>
      %32 = vector.broadcast %31 : vector<1x16xf32> to vector<8x16xf32>
      %33 = arith.mulf %30, %32 : vector<8x16xf32>
      %cst_22 = arith.constant dense<0.000000e+00> : vector<8xf32>
      %34 = vector.multi_reduction <add>, %33, %cst_22 [1] : vector<8x16xf32> to vector<8xf32>
      %35 = vector.shape_cast %34 : vector<8xf32> to vector<8x1xf32>
      %c0_23 = arith.constant 0 : index
      %c0_24 = arith.constant 0 : index
      %36 = vector.load %arg8[%c0_23, %c0_24] : memref<1x1xf32, #tpu.memory_space<vmem>>, vector<1x1xf32>
      %37 = vector.broadcast %36 : vector<1x1xf32> to vector<8x1xf32>
      %38 = arith.addf %35, %37 : vector<8x1xf32>
      %c0_25 = arith.constant 0 : index
      %c0_26 = arith.constant 0 : index
      %39 = vector.load %arg11[%c0_25, %c0_26] : memref<8x1xf32, #tpu.memory_space<vmem>>, vector<8x1xf32>
      tpu.vector_store %arg11[%c0_25, %c0_26], %38 {strides = array<i32>} : memref<8x1xf32, #tpu.memory_space<vmem>>, vector<8x1xf32>,
    } else {
    }
    %c128_i32 = arith.constant 128 : i32
    %3 = arith.muli %arg1, %c128_i32 : i32
    %4 = tpu.assume_multiple %3, 128 : i32
    %c0 = arith.constant 0 : index
    %5 = arith.index_cast %4 : i32 to index
    %6 = vector.load %arg9[%c0, %5] : memref<1x128xf32, #tpu.memory_space<vmem>>, vector<1x128xf32>
    %c0_1 = arith.constant 0 : index
    %c0_2 = arith.constant 0 : index
    %7 = vector.load %arg11[%c0_1, %c0_2] : memref<8x1xf32, #tpu.memory_space<vmem>>, vector<8x1xf32>
    %8 = vector.broadcast %7 : vector<8x1xf32> to vector<8x128xf32>
    %9 = vector.broadcast %6 : vector<1x128xf32> to vector<8x128xf32>
    %10 = arith.addf %8, %9 : vector<8x128xf32>
    %cst = arith.constant 5.000000e-01 : f32
    %cst_3 = arith.constant 5.000000e+00 : f32
    %11 = vector.broadcast %cst : f32 to vector<8x128xf32>
    %12 = arith.maximumf %11, %10 : vector<8x128xf32>
    %13 = vector.broadcast %cst_3 : f32 to vector<8x128xf32>
    %14 = arith.minimumf %13, %12 : vector<8x128xf32>
    %c0_4 = arith.constant 0 : index
    %c0_5 = arith.constant 0 : index
    %15 = vector.load %arg10[%c0_4, %c0_5] : memref<8x128xf32, #tpu.memory_space<vmem>>, vector<8x128xf32>
    tpu.vector_store %arg10[%c0_4, %c0_5], %14 {strides = array<i32>} : memref<8x128xf32, #tpu.memory_space<vmem>>, vector<8x128xf32>,
    return
  }
  func.func @transform_0(%arg0: i32, %arg1: i32) -> (i32, i32) {
    %c0_i32 = arith.constant 0 : i32
    %c0_i32_0 = arith.constant 0 : i32
    return %arg0, %c0_i32 : i32, i32
  }
  func.func @transform_1(%arg0: i32, %arg1: i32) -> (i32, i32) {
    %c0_i32 = arith.constant 0 : i32
    %c0_i32_0 = arith.constant 0 : i32
    %c0_i32_1 = arith.constant 0 : i32
    return %c0_i32, %c0_i32_0 : i32, i32
  }
  func.func @transform_2(%arg0: i32, %arg1: i32) -> (i32, i32) {
    %c0_i32 = arith.constant 0 : i32
    %c0_i32_0 = arith.constant 0 : i32
    %c0_i32_1 = arith.constant 0 : i32
    return %c0_i32, %c0_i32_0 : i32, i32
  }
  func.func @transform_3(%arg0: i32, %arg1: i32) -> (i32, i32) {
    %c0_i32 = arith.constant 0 : i32
    %c0_i32_0 = arith.constant 0 : i32
    %c0_i32_1 = arith.constant 0 : i32
    return %c0_i32, %c0_i32_0 : i32, i32
  }
  func.func @transform_4(%arg0: i32, %arg1: i32) -> (i32, i32) {
    %c0_i32 = arith.constant 0 : i32
    %c0_i32_0 = arith.constant 0 : i32
    %c0_i32_1 = arith.constant 0 : i32
    return %c0_i32, %c0_i32_0 : i32, i32
  }
  func.func @transform_5(%arg0: i32, %arg1: i32) -> (i32, i32) {
    %c0_i32 = arith.constant 0 : i32
    %c0_i32_0 = arith.constant 0 : i32
    %c0_i32_1 = arith.constant 0 : i32
    return %c0_i32, %c0_i32_0 : i32, i32
  }
  func.func @transform_6(%arg0: i32, %arg1: i32) -> (i32, i32) {
    %c0_i32 = arith.constant 0 : i32
    %c0_i32_0 = arith.constant 0 : i32
    %c0_i32_1 = arith.constant 0 : i32
    return %c0_i32, %c0_i32_0 : i32, i32
  }
  func.func @transform_7(%arg0: i32, %arg1: i32) -> (i32, i32) {
    %c0_i32 = arith.constant 0 : i32
    %c0_i32_0 = arith.constant 0 : i32
    %c0_i32_1 = arith.constant 0 : i32
    return %c0_i32, %c0_i32_0 : i32, i32
  }
  func.func @transform_8(%arg0: i32, %arg1: i32) -> (i32, i32) {
    %c0_i32 = arith.constant 0 : i32
    return %arg0, %arg1 : i32, i32
  }
}

</mosaic_0001>

<bundles_post_ra>
// kernel: tpu_custom_call.1
= control target key start
LH: loop header
LB: loop body
LE: loop exit
PB: predicated region body
PF: predicated region fallthrough
CT: control target
= control target key end

     0   :  { %s283_s0 = inlined_call_operand.vmem [shape: f32[8,20], index: 0, kind: input, shape index: {}]   ;;  %s284_s1 = inlined_call_operand.vmem [shape: f32[20,32], index: 1, kind: input, shape index: {}]   ;;  %s285_s2 = inlined_call_operand.vmem [shape: f32[1,32], index: 2, kind: input, shape index: {}]   ;;  %s286_s3 = inlined_call_operand.vmem [shape: f32[32,16], index: 3, kind: input, shape index: {}]   ;;  %s287_s4 = inlined_call_operand.vmem [shape: f32[1,16], index: 4, kind: input, shape index: {}]   ;;  %s288_s5 = inlined_call_operand.vmem [shape: f32[1,16], index: 5, kind: input, shape index: {}]   ;;  %s289_s6 = inlined_call_operand.<no memory space> [shape: f32[1,1], index: 6, kind: input, shape index: {}]   ;;  %s290_s7 = inlined_call_operand.vmem [shape: f32[1,128], index: 7, kind: input, shape index: {}]   ;;  %s291_s8 = inlined_call_operand.hbm [shape: f32[8,8], index: 8, kind: output, shape index: {}]  }
   0x1   :  { %v13_v0 = vstv %s289_s6 }
   0x2   :  { %14 = vst [vmem:[#allocation3] sm:$0x1] %v13_v0 }
   0x3   :  { %v39_v1 = vld [vmem:[%s284_s1 + $0x10] sm:$0xf]  ;;  %vm48_vm0 = vcmask 1043456   ;;  %v38_v2 = vld [vmem:[%s284_s1 + $0x8] sm:$0xff]  ;;  %v37_v3 = vld [vmem:[%s284_s1] sm:$0xff]  ;;  %vm44_vm1 = vcmask 162816  }
   0x4   :  { %157 = vmatpush.msk.msra.mxu0 %vm48_vm0, %v39_v1  ;;  %v76_v4 = vld [vmem:[%s286_s3 + $0x18] sm:$0xff]  ;;  %v36_v5 = vld [vmem:[%s283_s0] sm:$0xff] }
   0x5   :  { %97 = vmatpush.msra.mxu1 %v76_v4 }
   0x6   :  { %66 = vmatpush.msra.mxu0 %v38_v2 }
   0x7   :  { %15 = vsyncpa [#allocation5], 0  ;;  %v75_v6 = vld [vmem:[%s286_s3 + $0x10] sm:$0xff]  ;;  %v74_v7 = vld [vmem:[%s286_s3 + $0x8] sm:$0xff]  ;;  %vm81_vm2 = vcmask 261120   ;;  %vm111_vm3 = vcmask 130048  }
   0x8   :  { %67 = vmatpush.msra.mxu0 %v37_v3  ;;  %98 = vmatpush.msra.mxu1 %v75_v6  ;;  %v73_v8 = vld [vmem:[%s286_s3] sm:$0xff]  ;;  %v194_v20 = vmov 0   ;;  %vm120_vm4 = vcmask 7168   ;;  %s147_s28 = sshll.u32 %s291_s8, 4  ;;  %s148_s28 = int_to_ptr.hbm [resolvable:$true] %s147_s28 }
   0x9   :  { %158 = vmatmul.msk.f32.vlgmr.msra.gmra.mxu0 %vm44_vm1, %v36_v5  ;;  %v163_v9 = vld [vmem:[%s285_s2] ss:$0 sm:$0xff]  ;;  %162 = vset.pattern.permute.xlu0 %v194_v20  ;;  %v166_v21 = vld [vmem:[#allocation3] ss:$0 sm:$0xff] }
   0xa   :  { %99 = vmatpush.msra.mxu1 %v74_v7  ;;  %v164_v13 = vld [vmem:[%s287_s4] ss:$0 sm:$0xff]  ;;  %s195_s4 = smov [#allocation4]  }
   0xb   :  { %v165_v16 = vld [vmem:[%s288_s5] ss:$0 sm:$0xff]  ;;  %s145_s5 = sshll.u32 %s195_s4, 4  ;;  %s146_s5 = int_to_ptr.vmem [resolvable:$true] %s145_s5 }
   0xc   :  { %100 = vmatpush.msra.mxu1 %v73_v8  ;;  %v167_v25 = vld [vmem:[%s290_s7] ss:$0 sm:$0xff] }
  0x86   :  { %v69_v10 = vpop.f32.mrf.mxu0 }
  0x87   :  { %v70_v11 = vadd.f32 %v163_v9, %v69_v10 }
  0x89   :  { %v72_v12 = vmax.f32 %v70_v11, 0.0 }
  0x8b   :  { %159 = vmatmul.msk.f32.vlgmr.msra.gmra.mxu1 %vm81_vm2, %v72_v12 }
 0x108   :  { %v102_v14 = vpop.f32.mrf.mxu1 }
 0x109   :  { %v103_v15 = vadd.f32 %v164_v13, %v102_v14 }
 0x10b   :  { %v105_v17 = vmax.f32 %v103_v15, 0.0 }
 0x10d   :  { %v110_v18 = vmul.f32 %v165_v16, %v105_v17 }
 0x10f   :  { %v112_v19 = vsel %vm111_vm3, %v110_v18, 0.0 }
 0x110   :  { %113 = vadd.xlane.f32.xlu0 %v112_v19 }
 0x183   :  { %v114_v22 = vpop.xlane.xlu0 %113 }
 0x184   :  { %v119_v23 = vadd.f32 %v166_v21, %v114_v22 }
 0x186   :  { %121 = vst.msk [vmem:[#allocation2] sm:$0xff] %vm120_vm4, %v119_v23 }
 0x18d   :  { %v127_v24 = vld [vmem:[#allocation2] sm:$0xff] }
 0x18e   :  { %130 = vperm.xlu0 %162, %v127_v24  }
 0x200   :  { %v131_v26 = vpop.permute.xlu0 %130 }
 0x201   :  { %v136_v27 = vadd.f32 %v167_v25, %v131_v26 }
 0x203   :  { %v137_v28 = vmax.f32 %v136_v27, 0.5 }
 0x205   :  { %v138_v29 = vmin.f32 %v137_v28, 5.0 }
 0x207   :  { %139 = vst [vmem:[#allocation4] sm:$0xff] %v138_v29 }
 0x208   :  { %150 = dma.vmem_to_hbm [thread:$0]  %s146_s5, 128, %s148_s28, [#allocation5]  }
 0x209   :  { %192 = dma.done.wait [#allocation5], 128  }
 0x20a   :  { %193 = vsyncadd [#allocation5], 4294967168 }
 0x20b   :  { %155 = vsyncpa [#allocation5], 1 }

</bundles_post_ra>
